<compile_context>
chip_gen: v5e
topology: v5e:2x2
jax: 0.10.0
libtpu: 0.0.40
codegen_flags: <defaults>
</compile_context>

<pallas_src>
import functools

import jax
import jax.numpy as jnp
from jax.experimental import pallas as pl
from jax.experimental.pallas import tpu as pltpu


def _round_up(x, m):
    return ((x + m - 1) // m) * m


# ----------------------------- fused Pallas kernel ---------------------------


def _fused_laaf_kernel(xt_ref, w0_ref, ba0_ref, *rest,
                       n_layers, small_din, small_dout):
    """Full DNN_LAAF forward on one (x_dim, TB) batch tile (batch on lanes)."""
    if n_layers > 1:
        wh_ref, bah_ref, wf_ref, bf_ref, o_ref = rest
    else:
        wf_ref, bf_ref, o_ref = rest

    xt = xt_ref[...]                       # (x_dim, TB)  f32, batch on lanes
    ba0 = ba0_ref[...]                     # (nh, 2): col0 = bias, col1 = n*a (pre-folded)
    b0 = ba0[:, 0:1]                       # (nh, 1) broadcasts over lanes
    na0 = ba0[:, 1:2]

    # ---- layer 0: W0^T x + b0 ------------------------------------------------
    if small_din:
        # Contraction dim is tiny (x_dim<=8) -> skip the MXU, do broadcast
        # outer-product FMAs on the VPU.
        w0 = w0_ref[...]                   # (nh, x_dim)
        h = b0 + w0[:, 0:1] * xt[0:1, :]
        for k in range(1, w0_ref.shape[1]):
            h = h + w0[:, k:k + 1] * xt[k:k + 1, :]
    else:
        h = jnp.dot(w0_ref[...], xt, preferred_element_type=jnp.float32) + b0
    h = jnp.tanh(na0 * h)                  # (nh, TB)

    # ---- hidden LAAF layers 1 .. n_layers-1 (MXU: (nh,nh) @ (nh,TB)) ----------
    # Static unroll is fine for small n_layers; switch to lax.fori_loop with
    # dynamic wh_ref[i] indexing if n_layers grows beyond ~4.
    for i in range(n_layers - 1):
        w = wh_ref[i]                      # (nh, nh), already transposed
        ba = bah_ref[i]                    # (nh, 2)
        h = jnp.tanh(ba[:, 1:2] *
                     (jnp.dot(w, h, preferred_element_type=jnp.float32) + ba[:, 0:1]))

    # ---- final plain linear ----------------------------------------------------
    bf = bf_ref[...]                       # (u_dim, 1)
    if small_dout:
        # u_dim tiny: VPU broadcast-mul + XLU sublane reduce instead of an
        # M=1-wide MXU push.
        wf = wf_ref[...]                   # (nh, u_dim)  (un-transposed on purpose)
        rows = [jnp.sum(wf[:, u:u + 1] * h, axis=0, keepdims=True)
                for u in range(wf_ref.shape[1])]
        y = (rows[0] if len(rows) == 1 else jnp.concatenate(rows, axis=0)) + bf
    else:
        y = jnp.dot(wf_ref[...], h, preferred_element_type=jnp.float32) + bf

    o_ref[...] = y.astype(o_ref.dtype)     # (u_dim, TB), lane-dense store


# ----------------------------- wrapper ---------------------------------------


def dnn_laaf_forward(params, x, n_layers, *, n=10.0, block_b=1024):
    """Fused forward pass: out = DNN_LAAF(x), out.shape == (B, u_dim)."""
    B, x_dim = x.shape
    u_dim = params["w"][n_layers].shape[1]
    small_din = x_dim <= 8
    small_dout = u_dim <= 8

    # --- feature-major parameter packing (n*a folded into the scale column) ---
    w0_t = params["w"][0].T                                           # (nh, x_dim)
    ba0 = jnp.stack([params["b"][0], n * params["a"][0]], axis=1)     # (nh, 2)
    wf_pack = params["w"][n_layers] if small_dout else params["w"][n_layers].T
    bf = params["b"][n_layers].reshape(u_dim, 1)                      # (u_dim, 1)

    const_inputs = [w0_t, ba0]
    if n_layers > 1:
        wh_t = jnp.stack([params["w"][i].T for i in range(1, n_layers)], axis=0)
        bah = jnp.stack(
            [jnp.stack([params["b"][i], n * params["a"][i]], axis=1)
             for i in range(1, n_layers)],
            axis=0,
        )                                                             # (L-1, nh, 2)
        const_inputs += [wh_t, bah]
    const_inputs += [wf_pack, bf]

    # --- batch tiling: lane-dense (multiple of 128), >=2 grid steps when possible ---
    tb = min(_round_up(max(int(block_b), 1), 128), _round_up(B, 128))
    tb = min(tb, max(128, _round_up(pl.cdiv(B, 2), 128)))   # let v7x's 2 TCs split the grid
    b_pad = _round_up(B, tb)

    xt = x.T                                                          # (x_dim, B)
    if b_pad != B:
        xt = jnp.pad(xt, ((0, 0), (0, b_pad - B)))
    grid = (b_pad // tb,)

    def _resident_spec(shape):
        # same block index every grid step -> stays VMEM-resident (no re-DMA)
        nd = len(shape)
        return pl.BlockSpec(shape, lambda i, _nd=nd: (0,) * _nd)

    in_specs = [pl.BlockSpec((x_dim, tb), lambda i: (0, i))]
    in_specs += [_resident_spec(a.shape) for a in const_inputs]

    out = pl.pallas_call(
        functools.partial(_fused_laaf_kernel, n_layers=n_layers,
                          small_din=small_din, small_dout=small_dout),
        out_shape=jax.ShapeDtypeStruct((u_dim, b_pad), x.dtype),
        grid=grid,
        in_specs=in_specs,
        out_specs=pl.BlockSpec((u_dim, tb), lambda i: (0, i)),
        compiler_params=pltpu.CompilerParams(
            dimension_semantics=("parallel",)),
    )(xt, *const_inputs)

    return out[:, :B].T                                               # (B, u_dim)


# ------------------------------ model setup -----------------------------------


def init_params(key, n_layers, n_hidden, x_dim, u_dim):
    """Deterministic parameter init mirroring the shapes in DNN_LAAF.__init__."""
    keys = jax.random.split(key, 2 * (n_layers + 1) + 1)
    params = {}

    # a : (n_layers, n_hidden) xavier-uniform with gain 1.4
    gain = 1.4
    fan_in, fan_out = n_hidden, n_layers
    bound = gain * jnp.sqrt(6.0 / (fan_in + fan_out))
    params["a"] = jax.random.uniform(
        keys[0], (n_layers, n_hidden), jnp.float32, -bound, bound
    )

    dims = [x_dim] + [n_hidden] * n_layers + [u_dim]
    ws, bs = [], []
    for i in range(n_layers + 1):
        din, dout = dims[i], dims[i + 1]
        wb = 1.0 / jnp.sqrt(float(din))
        ws.append(jax.random.uniform(keys[1 + 2 * i], (din, dout), jnp.float32, -wb, wb))
        bs.append(jax.random.uniform(keys[2 + 2 * i], (dout,), jnp.float32, -wb, wb))
    params["w"] = ws
    params["b"] = bs
    return params


def dnn_laaf_reference(params, x, n_layers):
    """Plain-JAX reference for correctness checking."""
    out = x
    for i in range(n_layers):
        x1 = out @ params["w"][i] + params["b"][i]
        out = jnp.tanh(10.0 * params["a"][i] * x1)
    return out @ params["w"][n_layers] + params["b"][n_layers]


# ---------------------------------- main --------------------------------------

if __name__ == "__main__":
    n_layers = 3
    n_hidden = 32
    x_dim = 2
    u_dim = 1

    key = jax.random.PRNGKey(0)
    pkey, xkey, xkey2, xkey3 = jax.random.split(key, 4)
    params = init_params(pkey, n_layers, n_hidden, x_dim, u_dim)

    # small batch -> single grid step (tb = 128, padded)
    x = jax.random.normal(xkey, (8, x_dim), jnp.float32)
    out = jax.block_until_ready(dnn_laaf_forward(params, x, n_layers))
    ref = dnn_laaf_reference(params, x, n_layers)
    assert out.shape == (8, u_dim)
    assert jnp.allclose(out, ref, atol=1e-5, rtol=1e-5), "mismatch vs reference (B=8)"

    # non-divisible batch with default block_b -> multi-step grid + padding path
    x2 = jax.random.normal(xkey2, (300, x_dim), jnp.float32)
    out2 = jax.block_until_ready(dnn_laaf_forward(params, x2, n_layers))
    ref2 = dnn_laaf_reference(params, x2, n_layers)
    assert out2.shape == (300, u_dim)
    assert jnp.allclose(out2, ref2, atol=1e-5, rtol=1e-5), "mismatch vs reference (B=300)"

    # n_layers == 1 path (LAAF layer + final linear only)
    params1 = init_params(pkey, 1, n_hidden, x_dim, u_dim)
    x3 = jax.random.normal(xkey3, (8, x_dim), jnp.float32)
    out3 = jax.block_until_ready(dnn_laaf_forward(params1, x3, 1))
    ref3 = dnn_laaf_reference(params1, x3, 1)
    assert out3.shape == (8, u_dim)
    assert jnp.allclose(out3, ref3, atol=1e-5, rtol=1e-5), "mismatch vs reference (n_layers=1)"

    print("KERNEL_OK")
</pallas_src>

<mosaic_0001>
module attributes {stable_mosaic.version = 11 : i64} {
  func.func @_fused_laaf_kernel(%arg0: i32, %arg1: memref<2x128xf32, #tpu.memory_space<vmem>>, %arg2: memref<32x2xf32, #tpu.memory_space<vmem>>, %arg3: memref<32x2xf32, #tpu.memory_space<vmem>>, %arg4: memref<2x32x32xf32, #tpu.memory_space<vmem>>, %arg5: memref<2x32x2xf32, #tpu.memory_space<vmem>>, %arg6: memref<32x1xf32, #tpu.memory_space<vmem>>, %arg7: memref<1x1xf32, #tpu.memory_space<vmem>>, %arg8: memref<1x128xf32, #tpu.memory_space<vmem>>) attributes {dimension_semantics = [#tpu.dimension_semantics<parallel>], iteration_bounds = array<i64: 1>, scalar_prefetch = 0 : i64, scratch_operands = 0 : i64, tpu.core_type = #tpu.core_type<tc>, window_params = [{transform_indices = @transform_0, window_bounds = array<i64: 2, 128>}, {pipeline_mode = #tpu.pipeline_mode<synchronous>, transform_indices = @transform_1, window_bounds = array<i64: 32, 2>}, {pipeline_mode = #tpu.pipeline_mode<synchronous>, transform_indices = @transform_2, window_bounds = array<i64: 32, 2>}, {pipeline_mode = #tpu.pipeline_mode<synchronous>, transform_indices = @transform_3, window_bounds = array<i64: 2, 32, 32>}, {pipeline_mode = #tpu.pipeline_mode<synchronous>, transform_indices = @transform_4, window_bounds = array<i64: 2, 32, 2>}, {pipeline_mode = #tpu.pipeline_mode<synchronous>, transform_indices = @transform_5, window_bounds = array<i64: 32, 1>}, {pipeline_mode = #tpu.pipeline_mode<synchronous>, transform_indices = @transform_6, window_bounds = array<i64: 1, 1>}, {transform_indices = @transform_7, window_bounds = array<i64: 1, 128>}]} {
    %c0 = arith.constant 0 : index
    %c0_0 = arith.constant 0 : index
    %0 = vector.load %arg1[%c0, %c0_0] : memref<2x128xf32, #tpu.memory_space<vmem>>, vector<2x128xf32>
    %c0_1 = arith.constant 0 : index
    %c0_2 = arith.constant 0 : index
    %1 = vector.load %arg3[%c0_1, %c0_2] : memref<32x2xf32, #tpu.memory_space<vmem>>, vector<32x2xf32>
    %2 = vector.extract_strided_slice %1 {offsets = [0, 0], sizes = [32, 1], strides = [1, 1]} : vector<32x2xf32> to vector<32x1xf32>
    %3 = vector.extract_strided_slice %1 {offsets = [0, 1], sizes = [32, 1], strides = [1, 1]} : vector<32x2xf32> to vector<32x1xf32>
    %c0_3 = arith.constant 0 : index
    %c0_4 = arith.constant 0 : index
    %4 = vector.load %arg2[%c0_3, %c0_4] : memref<32x2xf32, #tpu.memory_space<vmem>>, vector<32x2xf32>
    %5 = vector.extract_strided_slice %4 {offsets = [0, 0], sizes = [32, 1], strides = [1, 1]} : vector<32x2xf32> to vector<32x1xf32>
    %6 = vector.extract_strided_slice %0 {offsets = [0, 0], sizes = [1, 128], strides = [1, 1]} : vector<2x128xf32> to vector<1x128xf32>
    %7 = vector.broadcast %5 : vector<32x1xf32> to vector<32x128xf32>
    %8 = vector.broadcast %6 : vector<1x128xf32> to vector<32x128xf32>
    %9 = arith.mulf %7, %8 : vector<32x128xf32>
    %10 = vector.broadcast %2 : vector<32x1xf32> to vector<32x128xf32>
    %11 = arith.addf %10, %9 : vector<32x128xf32>
    %12 = vector.extract_strided_slice %4 {offsets = [0, 1], sizes = [32, 1], strides = [1, 1]} : vector<32x2xf32> to vector<32x1xf32>
    %13 = vector.extract_strided_slice %0 {offsets = [1, 0], sizes = [1, 128], strides = [1, 1]} : vector<2x128xf32> to vector<1x128xf32>
    %14 = vector.broadcast %12 : vector<32x1xf32> to vector<32x128xf32>
    %15 = vector.broadcast %13 : vector<1x128xf32> to vector<32x128xf32>
    %16 = arith.mulf %14, %15 : vector<32x128xf32>
    %17 = arith.addf %11, %16 : vector<32x128xf32>
    %18 = vector.broadcast %3 : vector<32x1xf32> to vector<32x128xf32>
    %19 = arith.mulf %18, %17 : vector<32x128xf32>
    %20 = math.tanh %19 : vector<32x128xf32>
    %c0_5 = arith.constant 0 : index
    %c0_6 = arith.constant 0 : index
    %c0_7 = arith.constant 0 : index
    %21 = vector.load %arg4[%c0_5, %c0_6, %c0_7] : memref<2x32x32xf32, #tpu.memory_space<vmem>>, vector<1x32x32xf32>
    %22 = vector.shape_cast %21 : vector<1x32x32xf32> to vector<32x32xf32>
    %c0_8 = arith.constant 0 : index
    %c0_9 = arith.constant 0 : index
    %c0_10 = arith.constant 0 : index
    %23 = vector.load %arg5[%c0_8, %c0_9, %c0_10] : memref<2x32x2xf32, #tpu.memory_space<vmem>>, vector<1x32x2xf32>
    %24 = vector.shape_cast %23 : vector<1x32x2xf32> to vector<32x2xf32>
    %25 = vector.extract_strided_slice %24 {offsets = [0, 1], sizes = [32, 1], strides = [1, 1]} : vector<32x2xf32> to vector<32x1xf32>
    %cst = arith.constant dense<0.000000e+00> : vector<32x128xf32>
    %26 = tpu.matmul %22, %20, %cst {dimension_numbers = #tpu.dot_dimension_numbers<[1], [0], [0], [1], [0, 0, 1, 1], [], []>} : vector<32x32xf32>, vector<32x128xf32>, vector<32x128xf32> -> vector<32x128xf32>
    %27 = vector.extract_strided_slice %24 {offsets = [0, 0], sizes = [32, 1], strides = [1, 1]} : vector<32x2xf32> to vector<32x1xf32>
    %28 = vector.broadcast %27 : vector<32x1xf32> to vector<32x128xf32>
    %29 = arith.addf %26, %28 : vector<32x128xf32>
    %30 = vector.broadcast %25 : vector<32x1xf32> to vector<32x128xf32>
    %31 = arith.mulf %30, %29 : vector<32x128xf32>
    %32 = math.tanh %31 : vector<32x128xf32>
    %c1 = arith.constant 1 : index
    %c0_11 = arith.constant 0 : index
    %c0_12 = arith.constant 0 : index
    %33 = vector.load %arg4[%c1, %c0_11, %c0_12] : memref<2x32x32xf32, #tpu.memory_space<vmem>>, vector<1x32x32xf32>
    %34 = vector.shape_cast %33 : vector<1x32x32xf32> to vector<32x32xf32>
    %c1_13 = arith.constant 1 : index
    %c0_14 = arith.constant 0 : index
    %c0_15 = arith.constant 0 : index
    %35 = vector.load %arg5[%c1_13, %c0_14, %c0_15] : memref<2x32x2xf32, #tpu.memory_space<vmem>>, vector<1x32x2xf32>
    %36 = vector.shape_cast %35 : vector<1x32x2xf32> to vector<32x2xf32>
    %37 = vector.extract_strided_slice %36 {offsets = [0, 1], sizes = [32, 1], strides = [1, 1]} : vector<32x2xf32> to vector<32x1xf32>
    %cst_16 = arith.constant dense<0.000000e+00> : vector<32x128xf32>
    %38 = tpu.matmul %34, %32, %cst_16 {dimension_numbers = #tpu.dot_dimension_numbers<[1], [0], [0], [1], [0, 0, 1, 1], [], []>} : vector<32x32xf32>, vector<32x128xf32>, vector<32x128xf32> -> vector<32x128xf32>
    %39 = vector.extract_strided_slice %36 {offsets = [0, 0], sizes = [32, 1], strides = [1, 1]} : vector<32x2xf32> to vector<32x1xf32>
    %40 = vector.broadcast %39 : vector<32x1xf32> to vector<32x128xf32>
    %41 = arith.addf %38, %40 : vector<32x128xf32>
    %42 = vector.broadcast %37 : vector<32x1xf32> to vector<32x128xf32>
    %43 = arith.mulf %42, %41 : vector<32x128xf32>
    %44 = math.tanh %43 : vector<32x128xf32>
    %c0_17 = arith.constant 0 : index
    %c0_18 = arith.constant 0 : index
    %45 = vector.load %arg7[%c0_17, %c0_18] : memref<1x1xf32, #tpu.memory_space<vmem>>, vector<1x1xf32>
    %c0_19 = arith.constant 0 : index
    %c0_20 = arith.constant 0 : index
    %46 = vector.load %arg6[%c0_19, %c0_20] : memref<32x1xf32, #tpu.memory_space<vmem>>, vector<32x1xf32>
    %47 = vector.broadcast %46 : vector<32x1xf32> to vector<32x128xf32>
    %48 = arith.mulf %47, %44 : vector<32x128xf32>
    %cst_21 = arith.constant dense<0.000000e+00> : vector<128xf32>
    %49 = vector.multi_reduction <add>, %48, %cst_21 [0] : vector<32x128xf32> to vector<128xf32>
    %50 = vector.shape_cast %49 : vector<128xf32> to vector<1x128xf32>
    %51 = vector.broadcast %45 : vector<1x1xf32> to vector<1x128xf32>
    %52 = arith.addf %50, %51 : vector<1x128xf32>
    %c0_22 = arith.constant 0 : index
    %c0_23 = arith.constant 0 : index
    %53 = vector.load %arg8[%c0_22, %c0_23] : memref<1x128xf32, #tpu.memory_space<vmem>>, vector<1x128xf32>
    tpu.vector_store %arg8[%c0_22, %c0_23], %52 {strides = array<i32>} : memref<1x128xf32, #tpu.memory_space<vmem>>, vector<1x128xf32>,
    return
  }
  func.func @transform_0(%arg0: i32) -> (i32, i32) {
    %c0_i32 = arith.constant 0 : i32
    %c0_i32_0 = arith.constant 0 : i32
    return %c0_i32, %arg0 : i32, i32
  }
  func.func @transform_1(%arg0: i32) -> (i32, i32) {
    %c0_i32 = arith.constant 0 : i32
    %c0_i32_0 = arith.constant 0 : i32
    %c0_i32_1 = arith.constant 0 : i32
    return %c0_i32, %c0_i32_0 : i32, i32
  }
  func.func @transform_2(%arg0: i32) -> (i32, i32) {
    %c0_i32 = arith.constant 0 : i32
    %c0_i32_0 = arith.constant 0 : i32
    %c0_i32_1 = arith.constant 0 : i32
    return %c0_i32, %c0_i32_0 : i32, i32
  }
  func.func @transform_3(%arg0: i32) -> (i32, i32, i32) {
    %c0_i32 = arith.constant 0 : i32
    %c0_i32_0 = arith.constant 0 : i32
    %c0_i32_1 = arith.constant 0 : i32
    %c0_i32_2 = arith.constant 0 : i32
    return %c0_i32, %c0_i32_0, %c0_i32_1 : i32, i32, i32
  }
  func.func @transform_4(%arg0: i32) -> (i32, i32, i32) {
    %c0_i32 = arith.constant 0 : i32
    %c0_i32_0 = arith.constant 0 : i32
    %c0_i32_1 = arith.constant 0 : i32
    %c0_i32_2 = arith.constant 0 : i32
    return %c0_i32, %c0_i32_0, %c0_i32_1 : i32, i32, i32
  }
  func.func @transform_5(%arg0: i32) -> (i32, i32) {
    %c0_i32 = arith.constant 0 : i32
    %c0_i32_0 = arith.constant 0 : i32
    %c0_i32_1 = arith.constant 0 : i32
    return %c0_i32, %c0_i32_0 : i32, i32
  }
  func.func @transform_6(%arg0: i32) -> (i32, i32) {
    %c0_i32 = arith.constant 0 : i32
    %c0_i32_0 = arith.constant 0 : i32
    %c0_i32_1 = arith.constant 0 : i32
    return %c0_i32, %c0_i32_0 : i32, i32
  }
  func.func @transform_7(%arg0: i32) -> (i32, i32) {
    %c0_i32 = arith.constant 0 : i32
    %c0_i32_0 = arith.constant 0 : i32
    return %c0_i32, %arg0 : i32, i32
  }
}

</mosaic_0001>

<bundles_post_ra>
// kernel: tpu_custom_call.1
= control target key start
LH: loop header
LB: loop body
LE: loop exit
PB: predicated region body
PF: predicated region fallthrough
CT: control target
= control target key end

     0   :  { %s640_s0 = inlined_call_operand.vmem [shape: f32[2,128], index: 0, kind: input, shape index: {}]   ;;  %s641_s1 = inlined_call_operand.vmem [shape: f32[32,2], index: 1, kind: input, shape index: {}]   ;;  %s642_s2 = inlined_call_operand.vmem [shape: f32[32,2], index: 2, kind: input, shape index: {}]   ;;  %s643_s3 = inlined_call_operand.vmem [shape: f32[2,32,32], index: 3, kind: input, shape index: {}]   ;;  %s644_s4 = inlined_call_operand.vmem [shape: f32[2,32,2], index: 4, kind: input, shape index: {}]   ;;  %s645_s5 = inlined_call_operand.vmem [shape: f32[32,1], index: 5, kind: input, shape index: {}]   ;;  %s646_s6 = inlined_call_operand.<no memory space> [shape: f32[1,1], index: 6, kind: input, shape index: {}]   ;;  %s647_s7 = inlined_call_operand.hbm [shape: f32[1,128], index: 7, kind: output, shape index: {}]  }
   0x1   :  { %v12_v0 = vstv %s646_s6 }
   0x2   :  { %13 = vst [vmem:[#allocation2] sm:$0x1] %v12_v0 }
   0x3   :  { %v36_v1 = vld [vmem:[%s641_s1 + $0x10] sm:$0xff]  ;;  %v33_v2 = vld [vmem:[%s642_s2 + $0x18] sm:$0xff]  ;;  %v480_v3 = vmov 1   ;;  %v481_v4 = vmov 0   ;;  %v35_v5 = vld [vmem:[%s641_s1 + $0x8] sm:$0xff] }
   0x4   :  { %417 = vset.pattern.permute.xlu0 %v480_v3  ;;  %414 = vset.pattern.permute.xlu1 %v481_v4 }
   0x5   :  { %96 = vperm.xlu0 %417, %v36_v1   ;;  %80 = vperm.xlu1 %414, %v33_v2  }
   0x6   :  { %416 = vset.pattern.permute.xlu2 %v481_v4 }
   0x7   :  { %14 = vsyncpa [#allocation4], 0  ;;  %45 = vperm.xlu2 %416, %v35_v5   ;;  %v37_v6 = vld [vmem:[%s641_s1 + $0x18] sm:$0xff]  ;;  %v32_v7 = vld [vmem:[%s642_s2 + $0x10] sm:$0xff]  ;;  %vm164_vm0 = vcmask 261120   ;;  %s378_s8 = sshll.u32 %s647_s7, 4  ;;  %s379_s8 = int_to_ptr.hbm [resolvable:$true] %s378_s8 }
   0x8   :  { %v34_v8 = vld [vmem:[%s641_s1] sm:$0xff]  ;;  %v31_v9 = vld [vmem:[%s642_s2 + $0x8] sm:$0xff]  ;;  %v143_v11 = vld [vmem:[%s644_s4 + $0x18] sm:$0xff] }
   0x9   :  { %v30_v10 = vld [vmem:[%s642_s2] sm:$0xff]  ;;  %v141_v12 = vld [vmem:[%s644_s4 + $0x8] sm:$0xff]  ;;  %v142_v38 = vld [vmem:[%s644_s4 + $0x10] sm:$0xff] }
   0xa   :  { %v29_v18 = vld [vmem:[%s640_s0] sm:$0x3]  ;;  %v397_v52 = vld [vmem:[%s644_s4 + $0x30] sm:$0xff]  ;;  %v398_v62 = vld [vmem:[%s644_s4 + $0x38] sm:$0xff] }
   0xb   :  { %v58_v19 = vperm.slane %v29_v18, 0  ;;  %v103_v20 = vperm.slane %v29_v18, 1  ;;  %v140_v41 = vld [vmem:[%s644_s4] sm:$0xff]  ;;  %v138_v60 = vld [vmem:[%s643_s3 + $0x10] sm:$0xff]  ;;  %v137_v63 = vld [vmem:[%s643_s3 + $0x8] sm:$0xff] }
   0xc   :  { %v395_v42 = vld [vmem:[%s644_s4 + $0x20] sm:$0xff]  ;;  %v139_v0 = vld [vmem:[%s643_s3 + $0x18] sm:$0xff] }
   0xd   :  { %418 = vset.pattern.permute.xlu0 %v481_v4  ;;  %415 = vset.pattern.permute.xlu1 %v480_v3  ;;  %v136_v59 = vld [vmem:[%s643_s3] sm:$0xff] }
   0xe   :  { %55 = vperm.xlu0 %418, %v37_v6   ;;  %100 = vperm.xlu1 %415, %v37_v6  }
   0xf   :  { %75 = vperm.xlu2 %416, %v32_v7  }
  0x16   :  { %50 = vperm.xlu0 %418, %v36_v1   ;;  %419 = vset.pattern.permute.xlu1 %v481_v4  ;;  %v326_v1 = vld [vmem:[%s645_s5] sm:$0xff] }
  0x17   :  { %40 = vperm.xlu1 %419, %v34_v8   ;;  %70 = vperm.xlu2 %416, %v31_v9  }
  0x1e   :  { %65 = vperm.xlu0 %418, %v30_v10  }
  0x1f   :  { %420 = vset.pattern.permute.xlu1 %v480_v3  ;;  %421 = vset.pattern.permute.xlu2 %v480_v3 }
  0x20   :  { %92 = vperm.xlu1 %420, %v35_v5   ;;  %125 = vperm.xlu2 %421, %v33_v2   ;;  %v329_v2 = vld [vmem:[%s645_s5 + $0x18] sm:$0xff] }
  0x26   :  { %161 = vperm.xlu0 %418, %v143_v11  }
  0x28   :  { %88 = vperm.xlu1 %420, %v34_v8   ;;  %121 = vperm.xlu2 %421, %v32_v7   ;;  %v396_v7 = vld [vmem:[%s644_s4 + $0x28] sm:$0xff] }
  0x2e   :  { %151 = vperm.xlu0 %418, %v141_v12  }
  0x30   :  { %117 = vperm.xlu1 %420, %v31_v9   ;;  %113 = vperm.xlu2 %421, %v30_v10  }
  0x36   :  { %425 = vset.pattern.permute.xlu0 %v480_v3 }
  0x37   :  { %211 = vperm.xlu0 %425, %v141_v12   ;;  %v327_v12 = vld [vmem:[%s645_s5 + $0x8] sm:$0xff] }
  0x38   :  { %219 = vperm.xlu2 %421, %v143_v11   ;;  %422 = vset.pattern.permute.xlu1 %v481_v4 }
  0x39   :  { %156 = vperm.xlu1 %422, %v142_v38  }
  0x3f   :  { %302 = vperm.xlu0 %425, %v395_v42  }
  0x40   :  { %424 = vset.pattern.permute.xlu2 %v481_v4 }
  0x41   :  { %423 = vset.pattern.permute.xlu1 %v480_v3  ;;  %146 = vperm.xlu2 %424, %v140_v41  }
  0x42   :  { %215 = vperm.xlu1 %423, %v142_v38  }
  0x47   :  { %310 = vperm.xlu0 %425, %v397_v52  }
  0x49   :  { %242 = vperm.xlu2 %424, %v395_v42  }
  0x4a   :  { %207 = vperm.xlu1 %423, %v140_v41  }
  0x4f   :  { %428 = vset.pattern.permute.xlu0 %v481_v4 }
  0x50   :  { %337 = vperm.xlu0 %428, %v327_v12  }
  0x51   :  { %252 = vperm.xlu2 %424, %v397_v52  }
  0x52   :  { %426 = vset.pattern.permute.xlu1 %v481_v4 }
  0x53   :  { %247 = vperm.xlu1 %426, %v396_v7  }
  0x59   :  { %257 = vperm.xlu2 %424, %v398_v62  }
  0x5b   :  { %427 = vset.pattern.permute.xlu1 %v480_v3 }
  0x5c   :  { %306 = vperm.xlu1 %427, %v396_v7  }
  0x61   :  { %v46_v13 = vpop.permute.xlu2 %45  ;;  %332 = vperm.xlu2 %424, %v326_v1  }
  0x62   :  { %v60_v45 = vmul.f32 %v58_v19, %v46_v13 }
  0x64   :  { %314 = vperm.xlu1 %427, %v398_v62  }
  0x69   :  { %v76_v14 = vpop.permute.xlu2 %75  ;;  %347 = vperm.xlu2 %424, %v329_v2  }
  0x6c   :  { %429 = vset.pattern.permute.xlu1 %v481_v4  ;;  %v325_v4 = vld [vmem:[#allocation2] sm:$0x1] }
  0x71   :  { %v71_v17 = vpop.permute.xlu2 %70 }
  0x72   :  { %v84_v50 = vadd.f32 %v71_v17, %v60_v45 }
  0x77   :  { %v81_v15 = vpop.permute.xlu1 %80  ;;  %v97_v16 = vpop.permute.xlu0 %96 }
  0x78   :  { %v106_v32 = vmul.f32 %v103_v20, %v97_v16 }
  0x7a   :  { %v126_v26 = vpop.permute.xlu2 %125 }
  0x80   :  { %v56_v21 = vpop.permute.xlu0 %55  ;;  %v101_v22 = vpop.permute.xlu1 %100 }
  0x81   :  { %v62_v23 = vmul.f32 %v58_v19, %v56_v21  ;;  %v107_v25 = vmul.f32 %v103_v20, %v101_v22 }
  0x82   :  { %v122_v35 = vpop.permute.xlu2 %121 }
  0x83   :  { %v86_v24 = vadd.f32 %v81_v15, %v62_v23 }
  0x85   :  { %v111_v27 = vadd.f32 %v107_v25, %v86_v24 }
  0x87   :  { %v131_v28 = vmul.f32 %v126_v26, %v111_v27  ;;  %v328_v27 = vld [vmem:[%s645_s5 + $0x10] sm:$0xff] }
  0x88   :  { %v51_v29 = vpop.permute.xlu0 %50  ;;  %342 = vperm.xlu1 %429, %v328_v27  }
  0x89   :  { %430 = vtanh.f32 %v131_v28  ;;  %v61_v30 = vmul.f32 %v58_v19, %v51_v29  ;;  %v41_v31 = vpop.permute.xlu1 %40 }
  0x8a   :  { %v59_v46 = vmul.f32 %v58_v19, %v41_v31  ;;  %v114_v54 = vpop.permute.xlu2 %113  ;;  %v393_v31 = vld [vmem:[%s643_s3 + $0x30] sm:$0xff] }
  0x8b   :  { %v85_v33 = vadd.f32 %v76_v14, %v61_v30  ;;  %v391_v30 = vld [vmem:[%s643_s3 + $0x20] sm:$0xff] }
  0x8d   :  { %v110_v34 = vadd.f32 %v106_v32, %v85_v33  ;;  %v392_v33 = vld [vmem:[%s643_s3 + $0x28] sm:$0xff] }
  0x8f   :  { %v431_v36 = vpop.eup %430  ;;  %v130_v37 = vmul.f32 %v122_v35, %v110_v34  ;;  %v394_v34 = vld [vmem:[%s643_s3 + $0x38] sm:$0xff]  ;;  %s482_s3 = smov [#allocation3]  }
  0x90   :  { %189 = vmatpush.msra.mxu0 %v431_v36  ;;  %403 = vmatpush.msra.mxu2 %v431_v36  ;;  %v66_v43 = vpop.permute.xlu0 %65  ;;  %s376_s28 = sshll.u32 %s482_s3, 4  ;;  %s377_s28 = int_to_ptr.vmem [resolvable:$true] %s376_s28 }
  0x91   :  { %432 = vtanh.f32 %v130_v37  ;;  %v83_v48 = vadd.f32 %v66_v43, %v59_v46  ;;  %365 = vperm.xlu1 %429, %v325_v4  }
  0x92   :  { %v93_v39 = vpop.permute.xlu1 %92  ;;  %v220_v10 = vpop.permute.xlu2 %219 }
  0x93   :  { %v105_v49 = vmul.f32 %v103_v20, %v93_v39 }
  0x95   :  { %v109_v53 = vadd.f32 %v105_v49, %v84_v50 }
  0x97   :  { %v433_v40 = vpop.eup %432 }
  0x98   :  { %190 = vmatpush.msra.mxu0 %v433_v40  ;;  %404 = vmatpush.msra.mxu2 %v433_v40  ;;  %v162_v6 = vpop.permute.xlu0 %161 }
  0x9a   :  { %v89_v44 = vpop.permute.xlu1 %88 }
  0x9b   :  { %v104_v47 = vmul.f32 %v103_v20, %v89_v44  ;;  %v147_v19 = vpop.permute.xlu2 %146 }
  0x9d   :  { %v108_v51 = vadd.f32 %v104_v47, %v83_v48 }
  0x9f   :  { %v128_v56 = vmul.f32 %v114_v54, %v108_v51 }
  0xa0   :  { %v152_v13 = vpop.permute.xlu0 %151 }
  0xa2   :  { %v118_v55 = vpop.permute.xlu1 %117 }
  0xa3   :  { %v129_v57 = vmul.f32 %v118_v55, %v109_v53  ;;  %v243_v35 = vpop.permute.xlu2 %242 }
  0xa5   :  { %434 = vtanh.f32 %v129_v57 }
  0xa6   :  { %436 = vtanh.f32 %v128_v56 }
  0xa9   :  { %v212_v23 = vpop.permute.xlu0 %211 }
  0xab   :  { %v435_v58 = vpop.eup %434  ;;  %v157_v5 = vpop.permute.xlu1 %156 }
  0xac   :  { %191 = vmatpush.msra.mxu0 %v435_v58  ;;  %405 = vmatpush.msra.mxu2 %v435_v58  ;;  %v437_v61 = vpop.eup %436  ;;  %v253_v37 = vpop.permute.xlu2 %252 }
  0xae   :  { %192 = vmatpush.msra.mxu0 %v437_v61  ;;  %406 = vmatpush.msra.mxu2 %v437_v61 }
  0xaf   :  { %387 = vmatmul.msk.f32.vlgmr.msra.gmra.mxu0 %vm164_vm0, %v136_v59  ;;  %389 = vmatmul.msk.f32.vlgmr.msra.gmra.mxu2 %vm164_vm0, %v138_v60 }
  0xb1   :  { %v303_v38 = vpop.permute.xlu0 %302 }
  0xb4   :  { %v216_v11 = vpop.permute.xlu1 %215  ;;  %v258_v42 = vpop.permute.xlu2 %257 }
  0xb7   :  { %388 = vmatmul.msk.f32.gmra.mxu0 %vm164_vm0, %v137_v63  ;;  %390 = vmatmul.msk.f32.gmra.mxu2 %vm164_vm0, %v139_v0 }
  0xb9   :  { %v311_v47 = vpop.permute.xlu0 %310 }
  0xbc   :  { %v208_v24 = vpop.permute.xlu1 %207  ;;  %v333_v53 = vpop.permute.xlu2 %332 }
  0xc2   :  { %v338_v57 = vpop.permute.xlu0 %337 }
  0xc4   :  { %v348_v2 = vpop.permute.xlu2 %347 }
  0xc5   :  { %v248_v36 = vpop.permute.xlu1 %247 }
  0xce   :  { %v307_v40 = vpop.permute.xlu1 %306 }
  0xd6   :  { %v315_v51 = vpop.permute.xlu1 %314 }
  0xfa   :  { %v343_v63 = vpop.permute.xlu1 %342 }
 0x103   :  { %v366_v12 = vpop.permute.xlu1 %365 }
 0x12c   :  { %v194_v8 = vpop.f32.mrf.mxu0 }
 0x12d   :  { %v195_v20 = vadd.f32 %v194_v8, %v147_v19 }
 0x12f   :  { %v222_v25 = vmul.f32 %v208_v24, %v195_v20 }
 0x132   :  { %v200_v9 = vpop.f32.mrf.mxu2 }
 0x133   :  { %v201_v15 = vadd.f32 %v200_v9, %v157_v5 }
 0x134   :  { %v197_v14 = vpop.f32.mrf.mxu0 }
 0x135   :  { %v198_v17 = vadd.f32 %v197_v14, %v152_v13  ;;  %v224_v21 = vmul.f32 %v216_v11, %v201_v15  ;;  %v368_v15 = vperm.slane %v366_v12, 0 }
 0x137   :  { %v223_v3 = vmul.f32 %v212_v23, %v198_v17 }
 0x13a   :  { %v203_v16 = vpop.f32.mrf.mxu2 }
 0x13b   :  { %v204_v18 = vadd.f32 %v203_v16, %v162_v6 }
 0x13d   :  { %v225_v22 = vmul.f32 %v220_v10, %v204_v18 }
 0x13f   :  { %438 = vtanh.f32 %v225_v22 }
 0x140   :  { %440 = vtanh.f32 %v224_v21 }
 0x141   :  { %442 = vtanh.f32 %v223_v3 }
 0x142   :  { %444 = vtanh.f32 %v222_v25 }
 0x145   :  { %v439_v26 = vpop.eup %438 }
 0x146   :  { %284 = vmatpush.msra.mxu1 %v439_v26  ;;  %407 = vmatpush.msra.mxu3 %v439_v26  ;;  %v441_v28 = vpop.eup %440 }
 0x147   :  { %v443_v29 = vpop.eup %442 }
 0x148   :  { %285 = vmatpush.msra.mxu1 %v441_v28  ;;  %408 = vmatpush.msra.mxu3 %v441_v28  ;;  %v445_v32 = vpop.eup %444 }
 0x14a   :  { %286 = vmatpush.msra.mxu1 %v443_v29  ;;  %409 = vmatpush.msra.mxu3 %v443_v29 }
 0x14c   :  { %287 = vmatpush.msra.mxu1 %v445_v32  ;;  %410 = vmatpush.msra.mxu3 %v445_v32 }
 0x14d   :  { %399 = vmatmul.msk.f32.vlgmr.msra.gmra.mxu1 %vm164_vm0, %v391_v30  ;;  %401 = vmatmul.msk.f32.vlgmr.msra.gmra.mxu3 %vm164_vm0, %v393_v31 }
 0x155   :  { %400 = vmatmul.msk.f32.gmra.mxu1 %vm164_vm0, %v392_v33  ;;  %402 = vmatmul.msk.f32.gmra.mxu3 %vm164_vm0, %v394_v34 }
 0x1ca   :  { %v289_v39 = vpop.f32.mrf.mxu1 }
 0x1cb   :  { %v290_v41 = vadd.f32 %v289_v39, %v243_v35 }
 0x1cd   :  { %v317_v44 = vmul.f32 %v303_v38, %v290_v41 }
 0x1cf   :  { %446 = vtanh.f32 %v317_v44 }
 0x1d0   :  { %v295_v43 = vpop.f32.mrf.mxu3 }
 0x1d1   :  { %v296_v45 = vadd.f32 %v295_v43, %v253_v37 }
 0x1d2   :  { %v292_v46 = vpop.f32.mrf.mxu1 }
 0x1d3   :  { %v293_v48 = vadd.f32 %v292_v46, %v248_v36  ;;  %v319_v49 = vmul.f32 %v311_v47, %v296_v45 }
 0x1d5   :  { %v318_v50 = vmul.f32 %v307_v40, %v293_v48  ;;  %v447_v55 = vpop.eup %446 }
 0x1d6   :  { %v350_v59 = vmul.f32 %v447_v55, %v333_v53 }
 0x1d7   :  { %448 = vtanh.f32 %v318_v50 }
 0x1d8   :  { %v298_v52 = vpop.f32.mrf.mxu3  ;;  %450 = vtanh.f32 %v319_v49 }
 0x1d9   :  { %v299_v54 = vadd.f32 %v298_v52, %v258_v42 }
 0x1db   :  { %v320_v56 = vmul.f32 %v315_v51, %v299_v54 }
 0x1dd   :  { %v449_v58 = vpop.eup %448  ;;  %452 = vtanh.f32 %v320_v56 }
 0x1de   :  { %v351_v60 = vmul.f32 %v449_v58, %v338_v57  ;;  %v451_v61 = vpop.eup %450 }
 0x1df   :  { %v352_v0 = vmul.f32 %v451_v61, %v343_v63 }
 0x1e0   :  { %v354_v62 = vadd.f32 %v351_v60, %v350_v59 }
 0x1e2   :  { %v355_v6 = vadd.f32 %v354_v62, %v352_v0 }
 0x1e3   :  { %v453_v1 = vpop.eup %452 }
 0x1e4   :  { %v353_v5 = vmul.f32 %v453_v1, %v348_v2 }
 0x1e6   :  { %v356_v7 = vadd.f32 %v355_v6, %v353_v5 }
 0x1e8   :  { %v357_v8 = vrot.slane %v356_v7, 4 }
 0x1ea   :  { %v358_v9 = vadd.f32 %v357_v8, %v356_v7 }
 0x1ec   :  { %v359_v10 = vrot.slane %v358_v9, 2 }
 0x1ee   :  { %v360_v11 = vadd.f32 %v359_v10, %v358_v9 }
 0x1f0   :  { %v361_v13 = vrot.slane %v360_v11, 1 }
 0x1f2   :  { %v362_v14 = vadd.f32 %v361_v13, %v360_v11 }
 0x1f4   :  { %v369_v16 = vadd.f32 %v368_v15, %v362_v14 }
 0x1f6   :  { %370 = vst [vmem:[#allocation3] sm:$0x1] %v369_v16 }
 0x1f7   :  { %381 = dma.vmem_to_hbm [thread:$0]  %s377_s28, 16, %s379_s8, [#allocation4]  }
 0x1f8   :  { %478 = dma.done.wait [#allocation4], 16  }
 0x1f9   :  { %479 = vsyncadd [#allocation4], 4294967280 }
 0x1fa   :  { %386 = vsyncpa [#allocation4], 1 }

</bundles_post_ra>
